<compile_context>
chip_gen: v5e
topology: v5e:2x2
jax: 0.10.0
libtpu: 0.0.40
codegen_flags: <defaults>
</compile_context>

<pallas_src>
import jax
import jax.numpy as jnp
from jax.experimental import pallas as pl
from jax.experimental.pallas import tpu as pltpu


SUBLANE = 8                        # f32 sublane pack (second-to-last block dim)
MAX_TILE_M = 1024                  # upper bound on batch-tile rows
VMEM_BUDGET = 48 * 1024 * 1024     # conservative: fits v7x 64 MiB physical VMEM
MIN_ROWS_PER_CORE = 64             # split into >=2 grid steps above 2x this


def _round_up(n, m):
    return (n + m - 1) // m * m


def _ann_kernel(x_ref, w1_ref, b1_ref, w2_ref, b2_ref, w3_ref, b3_ref, o_ref):
    # x streams in as f32; cast to bf16 in-kernel so the MXU sees bf16 operands
    # while accumulation and the bias+ReLU epilogue stay in f32.
    x = x_ref[...].astype(jnp.bfloat16)
    h1 = jnp.dot(x, w1_ref[...], preferred_element_type=jnp.float32)
    h1 = jnp.maximum(h1 + b1_ref[...], 0.0)
    h2 = jnp.dot(h1.astype(jnp.bfloat16), w2_ref[...],
                 preferred_element_type=jnp.float32)
    h2 = jnp.maximum(h2 + b2_ref[...], 0.0)
    o = jnp.dot(h2.astype(jnp.bfloat16), w3_ref[...],
                preferred_element_type=jnp.float32)
    o_ref[...] = (o + b3_ref[...]).astype(o_ref.dtype)


def prepare_params(w1, b1, w2, b2, w3, b3):
    """One-time parameter prep: bf16 MXU weights, f32 (1, N) biases."""
    bias = lambda b: jnp.asarray(b, jnp.float32).reshape(1, -1)
    return (jnp.asarray(w1, jnp.bfloat16), bias(b1),
            jnp.asarray(w2, jnp.bfloat16), bias(b2),
            jnp.asarray(w3, jnp.bfloat16), bias(b3))


def _plan_tile_m(batch, input_size, hidden_size, output_size):
    """Pick the batch tile from the VMEM budget (static shapes -> Python ints)."""
    m_aligned = _round_up(batch, SUBLANE)

    # Resident (single-buffered) bf16 weights + f32 biases.
    resident = 2 * (input_size * hidden_size + hidden_size * hidden_size
                    + hidden_size * output_size) \
               + 4 * (2 * hidden_size + output_size)
    # Streamed x/out tiles (double-buffered, f32) + f32 intermediates/casts.
    per_row = 4 * 2 * (input_size + output_size) \
              + 4 * (2 * hidden_size + input_size + output_size)
    avail = VMEM_BUDGET - resident - (4 << 20)          # scheduling headroom
    cap = max(SUBLANE, (avail // per_row) // SUBLANE * SUBLANE)
    cap = min(cap, MAX_TILE_M)

    if m_aligned <= cap:
        if m_aligned >= 2 * MIN_ROWS_PER_CORE:
            # Enough work: give the grid >=2 "parallel" steps (v7x megacore).
            tile_m = _round_up((m_aligned + 1) // 2, SUBLANE)
        else:
            tile_m = m_aligned
    else:
        tile_m = cap
    return tile_m, _round_up(m_aligned, tile_m)


def _resident_spec(shape, single_buffer):
    # Constant index_map -> weights loaded once and kept VMEM-resident for the
    # whole grid; single-buffering halves their VMEM footprint.
    if single_buffer:
        return pl.BlockSpec(shape, lambda i: (0, 0), pipeline_mode=pl.Buffered(1))
    return pl.BlockSpec(shape, lambda i: (0, 0))


def _make_forward(single_buffer_weights):
    @jax.jit
    def fwd(x, w1, b1, w2, b2, w3, b3):
        x = x.astype(jnp.float32)
        batch, input_size = x.shape
        hidden_size = w1.shape[1]
        output_size = w3.shape[1]

        tile_m, m_p = _plan_tile_m(batch, input_size, hidden_size, output_size)
        xp = x if m_p == batch else jnp.pad(x, ((0, m_p - batch), (0, 0)))

        flops = 2 * m_p * (input_size * hidden_size + hidden_size * hidden_size
                           + hidden_size * output_size)
        bytes_accessed = (m_p * (input_size + output_size) * 4
                          + (w1.size + w2.size + w3.size) * 2
                          + (b1.size + b2.size + b3.size) * 4)

        res = lambda s: _resident_spec(s, single_buffer_weights)
        out = pl.pallas_call(
            _ann_kernel,
            out_shape=jax.ShapeDtypeStruct((m_p, output_size), jnp.float32),
            grid=(m_p // tile_m,),
            in_specs=[
                pl.BlockSpec((tile_m, input_size), lambda i: (i, 0)),  # x: streamed
                res((input_size, hidden_size)),                        # w1 (resident)
                res((1, hidden_size)),                                 # b1
                res((hidden_size, hidden_size)),                       # w2
                res((1, hidden_size)),                                 # b2
                res((hidden_size, output_size)),                       # w3
                res((1, output_size)),                                 # b3
            ],
            out_specs=pl.BlockSpec((tile_m, output_size), lambda i: (i, 0)),
            compiler_params=pltpu.CompilerParams(
                dimension_semantics=("parallel",),   # batch tiles shard across TCs
                vmem_limit_bytes=VMEM_BUDGET,
            ),
            cost_estimate=pl.CostEstimate(
                flops=flops, transcendentals=0, bytes_accessed=bytes_accessed),
        )(xp, w1, b1, w2, b2, w3, b3)

        return out if m_p == batch else out[:batch]

    return fwd


_forward_single = _make_forward(True)    # single-buffered resident weights
_forward_double = _make_forward(False)   # fallback (default buffering)
_single_buffer_ok = True


def ann_forward(x, params):
    """Forward pass; `params` must come from prepare_params (one-time prep)."""
    global _single_buffer_ok
    if _single_buffer_ok:
        try:
            return _forward_single(x, *params)
        except Exception:
            _single_buffer_ok = False   # pl.Buffered(1) unsupported -> fall back
    return _forward_double(x, *params)


def init_params(key, input_size, hidden_size, output_size):
    """Deterministic init mimicking torch.nn.Linear default U[-1/sqrt(fan_in), 1/sqrt(fan_in)]."""
    ks = jax.random.split(key, 6)

    def lin(kw, kb, fan_in, fan_out):
        bound = 1.0 / jnp.sqrt(jnp.float32(fan_in))
        w = jax.random.uniform(kw, (fan_in, fan_out), jnp.float32, -bound, bound)
        b = jax.random.uniform(kb, (1, fan_out), jnp.float32, -bound, bound)
        return w, b

    w1, b1 = lin(ks[0], ks[1], input_size, hidden_size)
    w2, b2 = lin(ks[2], ks[3], hidden_size, hidden_size)
    w3, b3 = lin(ks[4], ks[5], hidden_size, output_size)
    return w1, b1, w2, b2, w3, b3


if __name__ == "__main__":
    # Small shapes consistent with the module (hidden_size=128 as in the source).
    batch = 8
    input_size = 32
    hidden_size = 128
    output_size = 8

    key = jax.random.PRNGKey(0)
    kx, kp = jax.random.split(key)
    x = jax.random.normal(kx, (batch, input_size), jnp.float32)
    raw = init_params(kp, input_size, hidden_size, output_size)

    params = prepare_params(*raw)   # one-time weight cast, NOT in the per-call path
    out = jax.block_until_ready(ann_forward(x, params))
    assert out.shape == (batch, output_size)

    # Reference with identical bf16-operand / f32-accumulate math (tight check).
    w1, b1, w2, b2, w3, b3 = raw

    def bdot(a, b):
        return jnp.dot(a.astype(jnp.bfloat16), b.astype(jnp.bfloat16),
                       preferred_element_type=jnp.float32)

    ref = jnp.maximum(bdot(x, w1) + b1, 0.0)
    ref = jnp.maximum(bdot(ref, w2) + b2, 0.0)
    ref = bdot(ref, w3) + b3
    assert jnp.allclose(out, ref, atol=1e-4, rtol=1e-4), \
        float(jnp.max(jnp.abs(out - ref)))

    # Loose sanity check against the pure-f32 module math (bf16 matmul error bound).
    ref32 = jnp.maximum(x @ w1 + b1, 0.0)
    ref32 = jnp.maximum(ref32 @ w2 + b2, 0.0)
    ref32 = ref32 @ w3 + b3
    assert jnp.allclose(out, ref32, atol=5e-2, rtol=5e-2)

    print("KERNEL_OK")
</pallas_src>

<mosaic_0001>
module attributes {stable_mosaic.version = 11 : i64} {
  func.func @_ann_kernel(%arg0: i32, %arg1: memref<8x32xf32, #tpu.memory_space<vmem>>, %arg2: memref<32x128xbf16, #tpu.memory_space<vmem>>, %arg3: memref<1x128xf32, #tpu.memory_space<vmem>>, %arg4: memref<128x128xbf16, #tpu.memory_space<vmem>>, %arg5: memref<1x128xf32, #tpu.memory_space<vmem>>, %arg6: memref<128x8xbf16, #tpu.memory_space<vmem>>, %arg7: memref<1x8xf32, #tpu.memory_space<vmem>>, %arg8: memref<8x8xf32, #tpu.memory_space<vmem>>) attributes {dimension_semantics = [#tpu.dimension_semantics<parallel>], iteration_bounds = array<i64: 1>, scalar_prefetch = 0 : i64, scratch_operands = 0 : i64, tpu.core_type = #tpu.core_type<tc>, window_params = [{transform_indices = @transform_0, window_bounds = array<i64: 8, 32>}, {pipeline_mode = #tpu.pipeline_mode<synchronous>, transform_indices = @transform_1, window_bounds = array<i64: 32, 128>}, {pipeline_mode = #tpu.pipeline_mode<synchronous>, transform_indices = @transform_2, window_bounds = array<i64: 1, 128>}, {pipeline_mode = #tpu.pipeline_mode<synchronous>, transform_indices = @transform_3, window_bounds = array<i64: 128, 128>}, {pipeline_mode = #tpu.pipeline_mode<synchronous>, transform_indices = @transform_4, window_bounds = array<i64: 1, 128>}, {pipeline_mode = #tpu.pipeline_mode<synchronous>, transform_indices = @transform_5, window_bounds = array<i64: 128, 8>}, {pipeline_mode = #tpu.pipeline_mode<synchronous>, transform_indices = @transform_6, window_bounds = array<i64: 1, 8>}, {transform_indices = @transform_7, window_bounds = array<i64: 8, 8>}]} {
    %c0 = arith.constant 0 : index
    %c0_0 = arith.constant 0 : index
    %0 = vector.load %arg1[%c0, %c0_0] : memref<8x32xf32, #tpu.memory_space<vmem>>, vector<8x32xf32>
    %1 = arith.truncf %0 : vector<8x32xf32> to vector<8x32xbf16>
    %c0_1 = arith.constant 0 : index
    %c0_2 = arith.constant 0 : index
    %2 = vector.load %arg2[%c0_1, %c0_2] : memref<32x128xbf16, #tpu.memory_space<vmem>>, vector<32x128xbf16>
    %cst = arith.constant dense<0.000000e+00> : vector<8x128xf32>
    %3 = tpu.matmul %1, %2, %cst {dimension_numbers = #tpu.dot_dimension_numbers<[1], [0], [0], [1], [0, 0, 1, 1], [], []>} : vector<8x32xbf16>, vector<32x128xbf16>, vector<8x128xf32> -> vector<8x128xf32>
    %c0_3 = arith.constant 0 : index
    %c0_4 = arith.constant 0 : index
    %4 = vector.load %arg3[%c0_3, %c0_4] : memref<1x128xf32, #tpu.memory_space<vmem>>, vector<1x128xf32>
    %5 = vector.broadcast %4 : vector<1x128xf32> to vector<8x128xf32>
    %6 = arith.addf %3, %5 : vector<8x128xf32>
    %cst_5 = arith.constant 0.000000e+00 : f32
    %7 = vector.broadcast %cst_5 : f32 to vector<8x128xf32>
    %8 = arith.maximumf %6, %7 : vector<8x128xf32>
    %9 = arith.truncf %8 : vector<8x128xf32> to vector<8x128xbf16>
    %c0_6 = arith.constant 0 : index
    %c0_7 = arith.constant 0 : index
    %10 = vector.load %arg4[%c0_6, %c0_7] : memref<128x128xbf16, #tpu.memory_space<vmem>>, vector<128x128xbf16>
    %cst_8 = arith.constant dense<0.000000e+00> : vector<8x128xf32>
    %11 = tpu.matmul %9, %10, %cst_8 {dimension_numbers = #tpu.dot_dimension_numbers<[1], [0], [0], [1], [0, 0, 1, 1], [], []>} : vector<8x128xbf16>, vector<128x128xbf16>, vector<8x128xf32> -> vector<8x128xf32>
    %c0_9 = arith.constant 0 : index
    %c0_10 = arith.constant 0 : index
    %12 = vector.load %arg5[%c0_9, %c0_10] : memref<1x128xf32, #tpu.memory_space<vmem>>, vector<1x128xf32>
    %13 = vector.broadcast %12 : vector<1x128xf32> to vector<8x128xf32>
    %14 = arith.addf %11, %13 : vector<8x128xf32>
    %cst_11 = arith.constant 0.000000e+00 : f32
    %15 = vector.broadcast %cst_11 : f32 to vector<8x128xf32>
    %16 = arith.maximumf %14, %15 : vector<8x128xf32>
    %17 = arith.truncf %16 : vector<8x128xf32> to vector<8x128xbf16>
    %c0_12 = arith.constant 0 : index
    %c0_13 = arith.constant 0 : index
    %18 = vector.load %arg6[%c0_12, %c0_13] : memref<128x8xbf16, #tpu.memory_space<vmem>>, vector<128x8xbf16>
    %cst_14 = arith.constant dense<0.000000e+00> : vector<8x8xf32>
    %19 = tpu.matmul %17, %18, %cst_14 {dimension_numbers = #tpu.dot_dimension_numbers<[1], [0], [0], [1], [0, 0, 1, 1], [], []>} : vector<8x128xbf16>, vector<128x8xbf16>, vector<8x8xf32> -> vector<8x8xf32>
    %c0_15 = arith.constant 0 : index
    %c0_16 = arith.constant 0 : index
    %20 = vector.load %arg7[%c0_15, %c0_16] : memref<1x8xf32, #tpu.memory_space<vmem>>, vector<1x8xf32>
    %21 = vector.broadcast %20 : vector<1x8xf32> to vector<8x8xf32>
    %22 = arith.addf %19, %21 : vector<8x8xf32>
    %c0_17 = arith.constant 0 : index
    %c0_18 = arith.constant 0 : index
    %23 = vector.load %arg8[%c0_17, %c0_18] : memref<8x8xf32, #tpu.memory_space<vmem>>, vector<8x8xf32>
    tpu.vector_store %arg8[%c0_17, %c0_18], %22 {strides = array<i32>} : memref<8x8xf32, #tpu.memory_space<vmem>>, vector<8x8xf32>,
    return
  }
  func.func @transform_0(%arg0: i32) -> (i32, i32) {
    %c0_i32 = arith.constant 0 : i32
    %c0_i32_0 = arith.constant 0 : i32
    return %arg0, %c0_i32 : i32, i32
  }
  func.func @transform_1(%arg0: i32) -> (i32, i32) {
    %c0_i32 = arith.constant 0 : i32
    %c0_i32_0 = arith.constant 0 : i32
    %c0_i32_1 = arith.constant 0 : i32
    return %c0_i32, %c0_i32_0 : i32, i32
  }
  func.func @transform_2(%arg0: i32) -> (i32, i32) {
    %c0_i32 = arith.constant 0 : i32
    %c0_i32_0 = arith.constant 0 : i32
    %c0_i32_1 = arith.constant 0 : i32
    return %c0_i32, %c0_i32_0 : i32, i32
  }
  func.func @transform_3(%arg0: i32) -> (i32, i32) {
    %c0_i32 = arith.constant 0 : i32
    %c0_i32_0 = arith.constant 0 : i32
    %c0_i32_1 = arith.constant 0 : i32
    return %c0_i32, %c0_i32_0 : i32, i32
  }
  func.func @transform_4(%arg0: i32) -> (i32, i32) {
    %c0_i32 = arith.constant 0 : i32
    %c0_i32_0 = arith.constant 0 : i32
    %c0_i32_1 = arith.constant 0 : i32
    return %c0_i32, %c0_i32_0 : i32, i32
  }
  func.func @transform_5(%arg0: i32) -> (i32, i32) {
    %c0_i32 = arith.constant 0 : i32
    %c0_i32_0 = arith.constant 0 : i32
    %c0_i32_1 = arith.constant 0 : i32
    return %c0_i32, %c0_i32_0 : i32, i32
  }
  func.func @transform_6(%arg0: i32) -> (i32, i32) {
    %c0_i32 = arith.constant 0 : i32
    %c0_i32_0 = arith.constant 0 : i32
    %c0_i32_1 = arith.constant 0 : i32
    return %c0_i32, %c0_i32_0 : i32, i32
  }
  func.func @transform_7(%arg0: i32) -> (i32, i32) {
    %c0_i32 = arith.constant 0 : i32
    %c0_i32_0 = arith.constant 0 : i32
    return %arg0, %c0_i32 : i32, i32
  }
}

module attributes {stable_mosaic.version = 11 : i64} {
  func.func @_ann_kernel(%arg0: i32, %arg1: memref<8x32xf32, #tpu.memory_space<vmem>>, %arg2: memref<32x128xbf16, #tpu.memory_space<vmem>>, %arg3: memref<1x128xf32, #tpu.memory_space<vmem>>, %arg4: memref<128x128xbf16, #tpu.memory_space<vmem>>, %arg5: memref<1x128xf32, #tpu.memory_space<vmem>>, %arg6: memref<128x8xbf16, #tpu.memory_space<vmem>>, %arg7: memref<1x8xf32, #tpu.memory_space<vmem>>, %arg8: memref<8x8xf32, #tpu.memory_space<vmem>>) attributes {dimension_semantics = [#tpu.dimension_semantics<parallel>], iteration_bounds = array<i64: 1>, scalar_prefetch = 0 : i64, scratch_operands = 0 : i64, tpu.core_type = #tpu.core_type<tc>, window_params = [{transform_indices = @transform_0, window_bounds = array<i64: 8, 32>}, {pipeline_mode = #tpu.pipeline_mode<synchronous>, transform_indices = @transform_1, window_bounds = array<i64: 32, 128>}, {pipeline_mode = #tpu.pipeline_mode<synchronous>, transform_indices = @transform_2, window_bounds = array<i64: 1, 128>}, {pipeline_mode = #tpu.pipeline_mode<synchronous>, transform_indices = @transform_3, window_bounds = array<i64: 128, 128>}, {pipeline_mode = #tpu.pipeline_mode<synchronous>, transform_indices = @transform_4, window_bounds = array<i64: 1, 128>}, {pipeline_mode = #tpu.pipeline_mode<synchronous>, transform_indices = @transform_5, window_bounds = array<i64: 128, 8>}, {pipeline_mode = #tpu.pipeline_mode<synchronous>, transform_indices = @transform_6, window_bounds = array<i64: 1, 8>}, {transform_indices = @transform_7, window_bounds = array<i64: 8, 8>}]} {
    %c0 = arith.constant 0 : index
    %c0_0 = arith.constant 0 : index
    %0 = vector.load %arg1[%c0, %c0_0] : memref<8x32xf32, #tpu.memory_space<vmem>>, vector<8x32xf32>
    %1 = arith.truncf %0 : vector<8x32xf32> to vector<8x32xbf16>
    %c0_1 = arith.constant 0 : index
    %c0_2 = arith.constant 0 : index
    %2 = vector.load %arg2[%c0_1, %c0_2] : memref<32x128xbf16, #tpu.memory_space<vmem>>, vector<32x128xbf16>
    %cst = arith.constant dense<0.000000e+00> : vector<8x128xf32>
    %3 = tpu.matmul %1, %2, %cst {dimension_numbers = #tpu.dot_dimension_numbers<[1], [0], [0], [1], [0, 0, 1, 1], [], []>} : vector<8x32xbf16>, vector<32x128xbf16>, vector<8x128xf32> -> vector<8x128xf32>
    %c0_3 = arith.constant 0 : index
    %c0_4 = arith.constant 0 : index
    %4 = vector.load %arg3[%c0_3, %c0_4] : memref<1x128xf32, #tpu.memory_space<vmem>>, vector<1x128xf32>
    %5 = vector.broadcast %4 : vector<1x128xf32> to vector<8x128xf32>
    %6 = arith.addf %3, %5 : vector<8x128xf32>
    %cst_5 = arith.constant 0.000000e+00 : f32
    %7 = vector.broadcast %cst_5 : f32 to vector<8x128xf32>
    %8 = arith.maximumf %6, %7 : vector<8x128xf32>
    %9 = arith.truncf %8 : vector<8x128xf32> to vector<8x128xbf16>
    %c0_6 = arith.constant 0 : index
    %c0_7 = arith.constant 0 : index
    %10 = vector.load %arg4[%c0_6, %c0_7] : memref<128x128xbf16, #tpu.memory_space<vmem>>, vector<128x128xbf16>
    %cst_8 = arith.constant dense<0.000000e+00> : vector<8x128xf32>
    %11 = tpu.matmul %9, %10, %cst_8 {dimension_numbers = #tpu.dot_dimension_numbers<[1], [0], [0], [1], [0, 0, 1, 1], [], []>} : vector<8x128xbf16>, vector<128x128xbf16>, vector<8x128xf32> -> vector<8x128xf32>
    %c0_9 = arith.constant 0 : index
    %c0_10 = arith.constant 0 : index
    %12 = vector.load %arg5[%c0_9, %c0_10] : memref<1x128xf32, #tpu.memory_space<vmem>>, vector<1x128xf32>
    %13 = vector.broadcast %12 : vector<1x128xf32> to vector<8x128xf32>
    %14 = arith.addf %11, %13 : vector<8x128xf32>
    %cst_11 = arith.constant 0.000000e+00 : f32
    %15 = vector.broadcast %cst_11 : f32 to vector<8x128xf32>
    %16 = arith.maximumf %14, %15 : vector<8x128xf32>
    %17 = arith.truncf %16 : vector<8x128xf32> to vector<8x128xbf16>
    %c0_12 = arith.constant 0 : index
    %c0_13 = arith.constant 0 : index
    %18 = vector.load %arg6[%c0_12, %c0_13] : memref<128x8xbf16, #tpu.memory_space<vmem>>, vector<128x8xbf16>
    %cst_14 = arith.constant dense<0.000000e+00> : vector<8x8xf32>
    %19 = tpu.matmul %17, %18, %cst_14 {dimension_numbers = #tpu.dot_dimension_numbers<[1], [0], [0], [1], [0, 0, 1, 1], [], []>} : vector<8x128xbf16>, vector<128x8xbf16>, vector<8x8xf32> -> vector<8x8xf32>
    %c0_15 = arith.constant 0 : index
    %c0_16 = arith.constant 0 : index
    %20 = vector.load %arg7[%c0_15, %c0_16] : memref<1x8xf32, #tpu.memory_space<vmem>>, vector<1x8xf32>
    %21 = vector.broadcast %20 : vector<1x8xf32> to vector<8x8xf32>
    %22 = arith.addf %19, %21 : vector<8x8xf32>
    %c0_17 = arith.constant 0 : index
    %c0_18 = arith.constant 0 : index
    %23 = vector.load %arg8[%c0_17, %c0_18] : memref<8x8xf32, #tpu.memory_space<vmem>>, vector<8x8xf32>
    tpu.vector_store %arg8[%c0_17, %c0_18], %22 {strides = array<i32>} : memref<8x8xf32, #tpu.memory_space<vmem>>, vector<8x8xf32>,
    return
  }
  func.func @transform_0(%arg0: i32) -> (i32, i32) {
    %c0_i32 = arith.constant 0 : i32
    %c0_i32_0 = arith.constant 0 : i32
    return %arg0, %c0_i32 : i32, i32
  }
  func.func @transform_1(%arg0: i32) -> (i32, i32) {
    %c0_i32 = arith.constant 0 : i32
    %c0_i32_0 = arith.constant 0 : i32
    %c0_i32_1 = arith.constant 0 : i32
    return %c0_i32, %c0_i32_0 : i32, i32
  }
  func.func @transform_2(%arg0: i32) -> (i32, i32) {
    %c0_i32 = arith.constant 0 : i32
    %c0_i32_0 = arith.constant 0 : i32
    %c0_i32_1 = arith.constant 0 : i32
    return %c0_i32, %c0_i32_0 : i32, i32
  }
  func.func @transform_3(%arg0: i32) -> (i32, i32) {
    %c0_i32 = arith.constant 0 : i32
    %c0_i32_0 = arith.constant 0 : i32
    %c0_i32_1 = arith.constant 0 : i32
    return %c0_i32, %c0_i32_0 : i32, i32
  }
  func.func @transform_4(%arg0: i32) -> (i32, i32) {
    %c0_i32 = arith.constant 0 : i32
    %c0_i32_0 = arith.constant 0 : i32
    %c0_i32_1 = arith.constant 0 : i32
    return %c0_i32, %c0_i32_0 : i32, i32
  }
  func.func @transform_5(%arg0: i32) -> (i32, i32) {
    %c0_i32 = arith.constant 0 : i32
    %c0_i32_0 = arith.constant 0 : i32
    %c0_i32_1 = arith.constant 0 : i32
    return %c0_i32, %c0_i32_0 : i32, i32
  }
  func.func @transform_6(%arg0: i32) -> (i32, i32) {
    %c0_i32 = arith.constant 0 : i32
    %c0_i32_0 = arith.constant 0 : i32
    %c0_i32_1 = arith.constant 0 : i32
    return %c0_i32, %c0_i32_0 : i32, i32
  }
  func.func @transform_7(%arg0: i32) -> (i32, i32) {
    %c0_i32 = arith.constant 0 : i32
    %c0_i32_0 = arith.constant 0 : i32
    return %arg0, %c0_i32 : i32, i32
  }
}

</mosaic_0001>

<bundles_post_ra>
// kernel: fwd.1
= control target key start
LH: loop header
LB: loop body
LE: loop exit
PB: predicated region body
PF: predicated region fallthrough
CT: control target
= control target key end

     0   :  { %12 = vsyncpa [#allocation3], 0  ;;  %s571_s0 = inlined_call_operand.hbm [shape: f32[8,32], index: 0, kind: input, shape index: {}]   ;;  %s572_s1 = inlined_call_operand.hbm [shape: bf16[32,128], index: 1, kind: input, shape index: {}]   ;;  %s573_s2 = inlined_call_operand.vmem [shape: f32[1,128], index: 2, kind: input, shape index: {}]   ;;  %s574_s3 = inlined_call_operand.vmem [shape: bf16[128,128], index: 3, kind: input, shape index: {}]   ;;  %s575_s4 = inlined_call_operand.vmem [shape: f32[1,128], index: 4, kind: input, shape index: {}]   ;;  %s576_s5 = inlined_call_operand.vmem [shape: bf16[128,8], index: 5, kind: input, shape index: {}]   ;;  %s577_s6 = inlined_call_operand.vmem [shape: f32[1,8], index: 6, kind: input, shape index: {}]   ;;  %s578_s7 = inlined_call_operand.hbm [shape: f32[8,8], index: 7, kind: output, shape index: {}]  }
   0x1   :  { %13 = vsyncpa [#allocation6], 0 }
   0x2   :  { %14 = vsyncpa [#allocation4], 0  ;;  %s20_s26 = sshll.u32 %s571_s0, 4  ;;  %s460_s27 = smov [#allocation2]   ;;  %s21_s26 = int_to_ptr.hbm [resolvable:$true] %s20_s26 }
   0x3   :  { %s22_s28 = sshll.u32 %s460_s27, 4  ;;  %s30_s8 = sshll.u32 %s572_s1, 4  ;;  %s23_s28 = int_to_ptr.vmem [resolvable:$true] %s22_s28  ;;  %s31_s8 = int_to_ptr.hbm [resolvable:$true] %s30_s8 }
   0x4   :  { %25 = dma.hbm_to_vmem [thread:$0]  %s21_s26, 128, %s23_s28, [#allocation3]  }
   0x5   :  { %s461_s9 = smov [#allocation5]   ;;  %s462_s11 = smov 64  }
   0x6   :  { %s32_s10 = sshll.u32 %s461_s9, 4  ;;  %s463_s12 = smov 4   ;;  %s33_s10 = int_to_ptr.vmem [resolvable:$true] %s32_s10 }
   0x7   :  { %38 = dma.hbm_to_vmem [thread:$0]  %s31_s8, 256, %s33_s10, [#allocation6], %s462_s11, %s462_s11, %s463_s12  }
   0x8   :  { %454 = dma.done.wait [#allocation3], 128  }
   0x9   :  { %455 = vsyncadd [#allocation3], 4294967168 }
   0xa   :  { %456 = dma.done.wait [#allocation6], 256  }
   0xb   :  { %457 = vsyncadd [#allocation6], 4294967040  ;;  %v357_v0 = vld [vmem:[#allocation5 + $0x8] sm:$0xff]  ;;  %v365_v1 = vld [vmem:[%s574_s3 + $0x38] sm:$0xff]  ;;  %vm80_vm0 = vcmask 261120   ;;  %s464_s22 = smov [#allocation7]  }
   0xc   :  { %90 = vmatpush.bf16.msra.mxu0 %v357_v0  ;;  %v356_v2 = vld [vmem:[#allocation5] sm:$0xff]  ;;  %v58_v3 = vld [vmem:[#allocation2] sm:$0xff]  ;;  %167 = vmatpush.bf16.msra.mxu1 %v365_v1  ;;  %v364_v4 = vld [vmem:[%s574_s3 + $0x30] sm:$0xff]  ;;  %s270_s23 = sshll.u32 %s464_s22, 4  ;;  %vm263_vm1 = vcmask 64512   ;;  %s271_s23 = int_to_ptr.vmem [resolvable:$true] %s270_s23 }
   0xd   :  { %v59_v5 = vpack.c.bf16 %v58_v3, %v58_v3  ;;  %v363_v6 = vld [vmem:[%s574_s3 + $0x28] sm:$0xff]  ;;  %v362_v7 = vld [vmem:[%s574_s3 + $0x20] sm:$0xff]  ;;  %v361_v8 = vld [vmem:[%s574_s3 + $0x18] sm:$0xff] }
   0xe   :  { %v360_v9 = vld [vmem:[%s574_s3 + $0x10] sm:$0xff]  ;;  %v359_v10 = vld [vmem:[%s574_s3 + $0x8] sm:$0xff]  ;;  %v358_v11 = vld [vmem:[%s574_s3] sm:$0xff] }
   0xf   :  { %v373_v12 = vld [vmem:[%s576_s5 + $0x38] sm:$0xff]  ;;  %v372_v13 = vld [vmem:[%s576_s5 + $0x30] sm:$0xff]  ;;  %v371_v14 = vld [vmem:[%s576_s5 + $0x28] sm:$0xff] }
  0x10   :  { %91 = vmatpush.bf16.msra.mxu0 %v356_v2  ;;  %168 = vmatpush.bf16.msra.mxu1 %v364_v4  ;;  %v370_v15 = vld [vmem:[%s576_s5 + $0x20] sm:$0xff]  ;;  %v369_v16 = vld [vmem:[%s576_s5 + $0x18] sm:$0xff]  ;;  %v368_v17 = vld [vmem:[%s576_s5 + $0x10] sm:$0xff] }
  0x11   :  { %250 = vmatpush.bf16.msra.mxu2 %v373_v12  ;;  %v379_v18 = vld [vmem:[%s573_s2] ss:$0 sm:$0xff]  ;;  %v367_v24 = vld [vmem:[%s576_s5 + $0x8] sm:$0xff] }
  0x12   :  { %v366_v25 = vld [vmem:[%s576_s5] sm:$0xff]  ;;  %s272_s5 = sshll.u32 %s578_s7, 4  ;;  %s273_s5 = int_to_ptr.hbm [resolvable:$true] %s272_s5 }
  0x13   :  { %291 = vmatmul.msk.bf16.vlgmr.msra.gmra.mxu0 %vm80_vm0, %v59_v5  ;;  %v380_v26 = vld [vmem:[%s575_s4] ss:$0 sm:$0xff] }
  0x14   :  { %169 = vmatpush.bf16.msra.mxu1 %v363_v6  ;;  %v381_v32 = vld [vmem:[%s577_s6] ss:$0 sm:$0xff] }
  0x15   :  { %251 = vmatpush.bf16.msra.mxu2 %v372_v13 }
  0x18   :  { %170 = vmatpush.bf16.msra.mxu1 %v362_v7 }
  0x19   :  { %252 = vmatpush.bf16.msra.mxu2 %v371_v14 }
  0x1c   :  { %171 = vmatpush.bf16.msra.mxu1 %v361_v8 }
  0x1d   :  { %253 = vmatpush.bf16.msra.mxu2 %v370_v15 }
  0x20   :  { %172 = vmatpush.bf16.msra.mxu1 %v360_v9 }
  0x21   :  { %254 = vmatpush.bf16.msra.mxu2 %v369_v16 }
  0x24   :  { %173 = vmatpush.bf16.msra.mxu1 %v359_v10 }
  0x25   :  { %255 = vmatpush.bf16.msra.mxu2 %v368_v17 }
  0x28   :  { %174 = vmatpush.bf16.msra.mxu1 %v358_v11 }
  0x29   :  { %256 = vmatpush.bf16.msra.mxu2 %v367_v24 }
  0x2d   :  { %257 = vmatpush.bf16.msra.mxu2 %v366_v25 }
  0x90   :  { %v93_v19 = vpop.f32.mrf.mxu0 }
  0x91   :  { %v94_v20 = vadd.f32 %v379_v18, %v93_v19 }
  0x93   :  { %v97_v21 = vmax.f32 %v94_v20, 0.0 }
  0x95   :  { %v98_v22 = vpack.c.bf16 %v97_v21, %v97_v21 }
  0x97   :  { %175 = vmatmul.bf16.vlgmr.msra.gmra.mxu1 %v98_v22 }
  0x98   :  { %v95_v23 = vpop.f32.mrf.mxu0 }
 0x114   :  { %v176_v27 = vpop.f32.mrf.mxu1 }
 0x115   :  { %v177_v28 = vadd.f32 %v380_v26, %v176_v27 }
 0x117   :  { %v180_v29 = vmax.f32 %v177_v28, 0.0 }
 0x119   :  { %v181_v30 = vpack.c.bf16 %v180_v29, %v180_v29 }
 0x11b   :  { %258 = vmatmul.bf16.vlgmr.msra.gmra.mxu2 %v181_v30 }
 0x11c   :  { %v178_v31 = vpop.f32.mrf.mxu1 }
 0x19e   :  { %v259_v33 = vpop.f32.mrf.mxu2 }
 0x19f   :  { %v260_v34 = vadd.f32 %v381_v32, %v259_v33 }
 0x1a1   :  { %264 = vst.msk [vmem:[#allocation7] sm:$0xff] %vm263_vm1, %v260_v34 }
 0x1a2   :  { %275 = dma.vmem_to_hbm [thread:$0]  %s271_s23, 128, %s273_s5, [#allocation4]  }
 0x1a6   :  { %v261_v35 = vpop.f32.mrf.mxu2 }
 0x1a7   :  { %458 = dma.done.wait [#allocation4], 128  }
 0x1a8   :  { %459 = vsyncadd [#allocation4], 4294967168 }
 0x1a9   :  { %280 = vsyncpa [#allocation3], 1 }
 0x1aa   :  { %281 = vsyncpa [#allocation6], 1 }
 0x1ab   :  { %282 = vsyncpa [#allocation4], 1 }

// kernel: fwd.1
= control target key start
LH: loop header
LB: loop body
LE: loop exit
PB: predicated region body
PF: predicated region fallthrough
CT: control target
= control target key end

     0   :  { %12 = vsyncpa [#allocation3], 0  ;;  %s571_s0 = inlined_call_operand.hbm [shape: f32[8,32], index: 0, kind: input, shape index: {}]   ;;  %s572_s1 = inlined_call_operand.hbm [shape: bf16[32,128], index: 1, kind: input, shape index: {}]   ;;  %s573_s2 = inlined_call_operand.vmem [shape: f32[1,128], index: 2, kind: input, shape index: {}]   ;;  %s574_s3 = inlined_call_operand.vmem [shape: bf16[128,128], index: 3, kind: input, shape index: {}]   ;;  %s575_s4 = inlined_call_operand.vmem [shape: f32[1,128], index: 4, kind: input, shape index: {}]   ;;  %s576_s5 = inlined_call_operand.vmem [shape: bf16[128,8], index: 5, kind: input, shape index: {}]   ;;  %s577_s6 = inlined_call_operand.vmem [shape: f32[1,8], index: 6, kind: input, shape index: {}]   ;;  %s578_s7 = inlined_call_operand.hbm [shape: f32[8,8], index: 7, kind: output, shape index: {}]  }
   0x1   :  { %13 = vsyncpa [#allocation6], 0 }
   0x2   :  { %14 = vsyncpa [#allocation4], 0  ;;  %s20_s26 = sshll.u32 %s571_s0, 4  ;;  %s460_s27 = smov [#allocation2]   ;;  %s21_s26 = int_to_ptr.hbm [resolvable:$true] %s20_s26 }
   0x3   :  { %s22_s28 = sshll.u32 %s460_s27, 4  ;;  %s30_s8 = sshll.u32 %s572_s1, 4  ;;  %s23_s28 = int_to_ptr.vmem [resolvable:$true] %s22_s28  ;;  %s31_s8 = int_to_ptr.hbm [resolvable:$true] %s30_s8 }
   0x4   :  { %25 = dma.hbm_to_vmem [thread:$0]  %s21_s26, 128, %s23_s28, [#allocation3]  }
   0x5   :  { %s461_s9 = smov [#allocation5]   ;;  %s462_s11 = smov 64  }
   0x6   :  { %s32_s10 = sshll.u32 %s461_s9, 4  ;;  %s463_s12 = smov 4   ;;  %s33_s10 = int_to_ptr.vmem [resolvable:$true] %s32_s10 }
   0x7   :  { %38 = dma.hbm_to_vmem [thread:$0]  %s31_s8, 256, %s33_s10, [#allocation6], %s462_s11, %s462_s11, %s463_s12  }
   0x8   :  { %454 = dma.done.wait [#allocation3], 128  }
   0x9   :  { %455 = vsyncadd [#allocation3], 4294967168 }
   0xa   :  { %456 = dma.done.wait [#allocation6], 256  }
   0xb   :  { %457 = vsyncadd [#allocation6], 4294967040  ;;  %v357_v0 = vld [vmem:[#allocation5 + $0x8] sm:$0xff]  ;;  %v365_v1 = vld [vmem:[%s574_s3 + $0x38] sm:$0xff]  ;;  %vm80_vm0 = vcmask 261120   ;;  %s464_s22 = smov [#allocation7]  }
   0xc   :  { %90 = vmatpush.bf16.msra.mxu0 %v357_v0  ;;  %v356_v2 = vld [vmem:[#allocation5] sm:$0xff]  ;;  %v58_v3 = vld [vmem:[#allocation2] sm:$0xff]  ;;  %167 = vmatpush.bf16.msra.mxu1 %v365_v1  ;;  %v364_v4 = vld [vmem:[%s574_s3 + $0x30] sm:$0xff]  ;;  %s270_s23 = sshll.u32 %s464_s22, 4  ;;  %vm263_vm1 = vcmask 64512   ;;  %s271_s23 = int_to_ptr.vmem [resolvable:$true] %s270_s23 }
   0xd   :  { %v59_v5 = vpack.c.bf16 %v58_v3, %v58_v3  ;;  %v363_v6 = vld [vmem:[%s574_s3 + $0x28] sm:$0xff]  ;;  %v362_v7 = vld [vmem:[%s574_s3 + $0x20] sm:$0xff]  ;;  %v361_v8 = vld [vmem:[%s574_s3 + $0x18] sm:$0xff] }
   0xe   :  { %v360_v9 = vld [vmem:[%s574_s3 + $0x10] sm:$0xff]  ;;  %v359_v10 = vld [vmem:[%s574_s3 + $0x8] sm:$0xff]  ;;  %v358_v11 = vld [vmem:[%s574_s3] sm:$0xff] }
   0xf   :  { %v373_v12 = vld [vmem:[%s576_s5 + $0x38] sm:$0xff]  ;;  %v372_v13 = vld [vmem:[%s576_s5 + $0x30] sm:$0xff]  ;;  %v371_v14 = vld [vmem:[%s576_s5 + $0x28] sm:$0xff] }
  0x10   :  { %91 = vmatpush.bf16.msra.mxu0 %v356_v2  ;;  %168 = vmatpush.bf16.msra.mxu1 %v364_v4  ;;  %v370_v15 = vld [vmem:[%s576_s5 + $0x20] sm:$0xff]  ;;  %v369_v16 = vld [vmem:[%s576_s5 + $0x18] sm:$0xff]  ;;  %v368_v17 = vld [vmem:[%s576_s5 + $0x10] sm:$0xff] }
  0x11   :  { %250 = vmatpush.bf16.msra.mxu2 %v373_v12  ;;  %v379_v18 = vld [vmem:[%s573_s2] ss:$0 sm:$0xff]  ;;  %v367_v24 = vld [vmem:[%s576_s5 + $0x8] sm:$0xff] }
  0x12   :  { %v366_v25 = vld [vmem:[%s576_s5] sm:$0xff]  ;;  %s272_s5 = sshll.u32 %s578_s7, 4  ;;  %s273_s5 = int_to_ptr.hbm [resolvable:$true] %s272_s5 }
  0x13   :  { %291 = vmatmul.msk.bf16.vlgmr.msra.gmra.mxu0 %vm80_vm0, %v59_v5  ;;  %v380_v26 = vld [vmem:[%s575_s4] ss:$0 sm:$0xff] }
  0x14   :  { %169 = vmatpush.bf16.msra.mxu1 %v363_v6  ;;  %v381_v32 = vld [vmem:[%s577_s6] ss:$0 sm:$0xff] }
  0x15   :  { %251 = vmatpush.bf16.msra.mxu2 %v372_v13 }
  0x18   :  { %170 = vmatpush.bf16.msra.mxu1 %v362_v7 }
  0x19   :  { %252 = vmatpush.bf16.msra.mxu2 %v371_v14 }
  0x1c   :  { %171 = vmatpush.bf16.msra.mxu1 %v361_v8 }
  0x1d   :  { %253 = vmatpush.bf16.msra.mxu2 %v370_v15 }
  0x20   :  { %172 = vmatpush.bf16.msra.mxu1 %v360_v9 }
  0x21   :  { %254 = vmatpush.bf16.msra.mxu2 %v369_v16 }
  0x24   :  { %173 = vmatpush.bf16.msra.mxu1 %v359_v10 }
  0x25   :  { %255 = vmatpush.bf16.msra.mxu2 %v368_v17 }
  0x28   :  { %174 = vmatpush.bf16.msra.mxu1 %v358_v11 }
  0x29   :  { %256 = vmatpush.bf16.msra.mxu2 %v367_v24 }
  0x2d   :  { %257 = vmatpush.bf16.msra.mxu2 %v366_v25 }
  0x90   :  { %v93_v19 = vpop.f32.mrf.mxu0 }
  0x91   :  { %v94_v20 = vadd.f32 %v379_v18, %v93_v19 }
  0x93   :  { %v97_v21 = vmax.f32 %v94_v20, 0.0 }
  0x95   :  { %v98_v22 = vpack.c.bf16 %v97_v21, %v97_v21 }
  0x97   :  { %175 = vmatmul.bf16.vlgmr.msra.gmra.mxu1 %v98_v22 }
  0x98   :  { %v95_v23 = vpop.f32.mrf.mxu0 }
 0x114   :  { %v176_v27 = vpop.f32.mrf.mxu1 }
 0x115   :  { %v177_v28 = vadd.f32 %v380_v26, %v176_v27 }
 0x117   :  { %v180_v29 = vmax.f32 %v177_v28, 0.0 }
 0x119   :  { %v181_v30 = vpack.c.bf16 %v180_v29, %v180_v29 }
 0x11b   :  { %258 = vmatmul.bf16.vlgmr.msra.gmra.mxu2 %v181_v30 }
 0x11c   :  { %v178_v31 = vpop.f32.mrf.mxu1 }
 0x19e   :  { %v259_v33 = vpop.f32.mrf.mxu2 }
 0x19f   :  { %v260_v34 = vadd.f32 %v381_v32, %v259_v33 }
 0x1a1   :  { %264 = vst.msk [vmem:[#allocation7] sm:$0xff] %vm263_vm1, %v260_v34 }
 0x1a2   :  { %275 = dma.vmem_to_hbm [thread:$0]  %s271_s23, 128, %s273_s5, [#allocation4]  }
 0x1a6   :  { %v261_v35 = vpop.f32.mrf.mxu2 }
 0x1a7   :  { %458 = dma.done.wait [#allocation4], 128  }
 0x1a8   :  { %459 = vsyncadd [#allocation4], 4294967168 }
 0x1a9   :  { %280 = vsyncpa [#allocation3], 1 }
 0x1aa   :  { %281 = vsyncpa [#allocation6], 1 }
 0x1ab   :  { %282 = vsyncpa [#allocation4], 1 }

</bundles_post_ra>
